<compile_context>
chip_gen: v5e
topology: v5e:2x2
jax: 0.10.0
libtpu: 0.0.40
codegen_flags: <defaults>
</compile_context>

<pallas_src>
import jax
import jax.numpy as jnp
from jax import lax
from jax.experimental import pallas as pl
from jax.experimental.pallas import tpu as pltpu

_NEG_PAD = -1e30  # probs mask value along N: exp(_NEG_PAD - max) == 0 in f32


# ----------------------------------------------------------------------------
# Hardware-derived defaults
# ----------------------------------------------------------------------------
def _device_kind():
    try:
        return jax.devices()[0].device_kind.lower()
    except Exception:
        return ""


def _num_tensorcores():
    # Only v7x has 2 TensorCores per chip; v5e/v6e have 1.
    return 2 if "v7" in _device_kind() else 1


def _vmem_capacity_bytes():
    try:
        info = pltpu.get_tpu_info()
        cap = getattr(info, "vmem_capacity_bytes", None)
        if cap:
            return int(cap)
    except Exception:
        pass
    return 64 * 1024 * 1024  # conservative (v7x-sized) default


def _default_tile_target_bytes():
    # Bigger feats tiles (fewer grid steps, longer DMAs) on the 128 MiB chips; keep the
    # budget smaller on v7x (64 MiB VMEM per TensorCore).
    return 8 * 1024 * 1024 if _vmem_capacity_bytes() >= 100 * 1024 * 1024 else 4 * 1024 * 1024


def _default_feats_buffers():
    # Deeper feats buffering on v5e (~0.8 TB/s HBM, tiny per-tile compute).
    return 3 if "v5" in _device_kind() else 2


def _vmem_limit_cap():
    return int(_vmem_capacity_bytes() * 3 // 4)


# ----------------------------------------------------------------------------
# Pallas kernel: online-softmax(probs, axis=N) @ feats^T, N tiled (flash-style)
# ----------------------------------------------------------------------------
def _make_kernel(n_total, tn, ragged):
    """Grid = (B, C_tiles, N_tiles), N innermost ("arbitrary").

    p_ref  : (CLS, TN)        probs tile (native dtype)
    f_ref  : (C_t, TN)        feats tile (native dtype, lane-dense along N)
    o_ref  : (CLS, C_t)       output tile (f32), written on the last N tile
    m_ref  : (CLS, 1)  f32    running max
    l_ref  : (CLS, 1)  f32    running denominator
    acc_ref: (CLS, C_t) f32   running (unnormalized) context accumulator
    """
    f32 = jnp.float32

    def kernel(p_ref, f_ref, o_ref, m_ref, l_ref, acc_ref):
        nt = pl.program_id(2)

        @pl.when(nt == 0)
        def _init():
            m_ref[...] = jnp.full_like(m_ref, _NEG_PAD)
            l_ref[...] = jnp.zeros_like(l_ref)
            acc_ref[...] = jnp.zeros_like(acc_ref)

        p = p_ref[...].astype(f32)              # (CLS, TN), small operand
        f = f_ref[...]                          # (C_t, TN), NATIVE dtype (no f32 widening)

        if ragged:
            # Last tile overruns N; mask garbage columns (never pad feats in HBM).
            valid = n_total - nt * tn           # >= tn for all but the last tile
            col = lax.broadcasted_iota(jnp.int32, (1, tn), 1)
            mask = col < valid
            p = jnp.where(mask, p, _NEG_PAD)
            f = jnp.where(mask, f, jnp.zeros_like(f))

        # Online softmax update.
        m_prev = m_ref[...]
        m_tile = jnp.max(p, axis=-1, keepdims=True)
        m_new = jnp.maximum(m_prev, m_tile)
        alpha = jnp.exp(m_prev - m_new)         # (CLS, 1)
        e = jnp.exp(p - m_new)                  # (CLS, TN) f32
        l_ref[...] = alpha * l_ref[...] + jnp.sum(e, axis=-1, keepdims=True)
        m_ref[...] = m_new

        # MXU: contract over N.  Cast the SMALL softmax tile down to the feats dtype for
        # sub-32-bit float feats instead of widening the big feats tile up to f32.
        f_dt = jnp.dtype(f_ref.dtype)
        if jnp.issubdtype(f_dt, jnp.floating) and f_dt.itemsize < 4:
            e_mm = e.astype(f_dt)
        else:
            e_mm = e
            if f.dtype != f32:
                f = f.astype(f32)               # non-float feats fallback (rare)
        acc_ref[...] = alpha * acc_ref[...] + lax.dot_general(
            e_mm, f,
            dimension_numbers=(((1,), (1,)), ((), ())),
            preferred_element_type=f32)

        @pl.when(nt == pl.num_programs(2) - 1)
        def _finalize():
            denom = l_ref[...]                   # (CLS, 1), >= 1
            inv = pl.reciprocal(denom, approx=True)   # EUP slot
            inv = inv * (2.0 - denom * inv)           # one Newton step -> ~f32 exact
            o_ref[...] = (acc_ref[...] * inv).astype(o_ref.dtype)

    return kernel


# ----------------------------------------------------------------------------
# Tiling helpers
# ----------------------------------------------------------------------------
def _choose_c_tile(c, n_cores):
    # Split large, 128-aligned C into two "parallel" tiles only when there are >= 2
    # TensorCores (v7x).  On single-TC chips a split just doubles grid steps.
    if n_cores >= 2 and c >= 512 and c % 256 == 0:
        return c // 2
    return c


def _choose_n_tile(n, c_tile, cls_p, f_item, p_item, target_bytes):
    """Pick the N tile.  Returns (tn, ragged).  Never requires padding feats in HBM."""
    per_col = c_tile * f_item + cls_p * p_item
    max_tn = max(128, (target_bytes // max(1, per_col)) // 128 * 128)
    if n <= max_tn:
        return n, False                         # whole N in one (full-extent) tile
    t = (max_tn // 128) * 128
    while t >= 128:                             # prefer a 128-multiple divisor of N
        if n % t == 0:
            return t, False
        t -= 128
    return max_tn, True                         # ragged: last tile masked in-kernel


def _make_feats_spec(c_tile, tn, buffers):
    idx = lambda bi, cj, ni: (bi, cj, ni)
    shape = (None, c_tile, tn)
    if buffers and buffers != 2 and hasattr(pl, "Buffered"):
        try:
            return pl.BlockSpec(shape, idx, pipeline_mode=pl.Buffered(buffers))
        except TypeError:
            pass
    return pl.BlockSpec(shape, idx)


# ----------------------------------------------------------------------------
# pallas_call wrapper
# ----------------------------------------------------------------------------
def _spatial_gather_pallas(probs_flat, feats_flat, c_tile, tn, ragged, feats_buffers):
    """probs_flat: (B, CLS_p, N); feats_flat: (B, C, N) -> (B, CLS_p, C) f32."""
    b, cls_p, n = probs_flat.shape
    _, c, _ = feats_flat.shape
    n_c_tiles = c // c_tile
    n_n_tiles = pl.cdiv(n, tn)

    p_item = probs_flat.dtype.itemsize
    f_item = feats_flat.dtype.itemsize

    kernel = _make_kernel(n, tn, ragged)

    def run(fb):
        est = (2 * cls_p * tn * p_item                 # probs tile (double-buffered)
               + max(2, fb) * c_tile * tn * f_item     # feats tile buffers
               + 2 * cls_p * c_tile * 4                # output block (double-buffered)
               + cls_p * c_tile * 4                    # accumulator scratch
               + 2 * cls_p * 128 * 4)                  # m/l scratch (padded)
        vmem_limit = int(min(max(2 * est, 32 * 1024 * 1024), _vmem_limit_cap()))

        return pl.pallas_call(
            kernel,
            out_shape=jax.ShapeDtypeStruct((b, cls_p, c), jnp.float32),
            grid_spec=pltpu.PrefetchScalarGridSpec(
                num_scalar_prefetch=0,
                grid=(b, n_c_tiles, n_n_tiles),
                in_specs=[
                    # probs tile: small, re-read per C-tile (negligible vs feats traffic).
                    pl.BlockSpec((None, cls_p, tn), lambda bi, cj, ni: (bi, 0, ni)),
                    # feats tile: native dtype/layout, lane-dense along N.
                    _make_feats_spec(c_tile, tn, fb),
                ],
                out_specs=pl.BlockSpec((None, cls_p, c_tile),
                                       lambda bi, cj, ni: (bi, 0, cj)),
                scratch_shapes=[
                    pltpu.VMEM((cls_p, 1), jnp.float32),       # running max
                    pltpu.VMEM((cls_p, 1), jnp.float32),       # running denominator
                    pltpu.VMEM((cls_p, c_tile), jnp.float32),  # accumulator
                ],
            ),
            compiler_params=pltpu.CompilerParams(
                dimension_semantics=("parallel", "parallel", "arbitrary"),
                vmem_limit_bytes=vmem_limit,
            ),
        )(probs_flat, feats_flat)

    fb = feats_buffers if feats_buffers is not None else _default_feats_buffers()
    if fb == 2:
        return run(2)
    try:
        return run(fb)
    except Exception:
        # pipeline_mode/Buffered unsupported in this jax version -> plain double-buffer.
        return run(2)


# ----------------------------------------------------------------------------
# Plain-JAX glue: bilinear resize (align_corners=True) as two separable matmuls
# ----------------------------------------------------------------------------
def _interp_matrix(in_size, out_size, dtype):
    """Row-stochastic (out_size, in_size) align_corners=True interpolation matrix."""
    if out_size > 1:
        pos = jnp.linspace(0.0, in_size - 1.0, out_size)
    else:
        pos = jnp.zeros((out_size,), jnp.float32)
    lo = jnp.clip(jnp.floor(pos).astype(jnp.int32), 0, in_size - 1)
    hi = jnp.clip(lo + 1, 0, in_size - 1)
    frac = pos - lo.astype(jnp.float32)
    w = ((1.0 - frac)[:, None] * jax.nn.one_hot(lo, in_size, dtype=jnp.float32)
         + frac[:, None] * jax.nn.one_hot(hi, in_size, dtype=jnp.float32))
    return w.astype(dtype)


def _bilinear_align_corners(x, out_h, out_w):
    """Matches F.interpolate(x, (out_h, out_w), mode='bilinear', align_corners=True)."""
    b, c, h, w = x.shape
    if (h, w) == (out_h, out_w):
        return x
    wy = _interp_matrix(h, out_h, x.dtype)        # (out_h, h)
    wx = _interp_matrix(w, out_w, x.dtype)        # (out_w, w)
    y = jnp.einsum('oh,bchw->bcow', wy, x)
    return jnp.einsum('bcow,pw->bcop', y, wx)


# ----------------------------------------------------------------------------
# Module-equivalent wrapper (SpatialGather_Module.forward)
# ----------------------------------------------------------------------------
def spatial_gather(feats, probs, cls_num=21, *, tile_target_bytes=None, feats_buffers=None):
    """feats: (B, C, H, W); probs: (B, CLS, Hp, Wp).
    Returns ocr_context: (B, C, CLS, 1), matching the PyTorch module."""
    del cls_num  # forward() never uses self.cls_num
    b, c, h, w = feats.shape
    cls = probs.shape[1]
    n = h * w
    out_dtype = jnp.promote_types(feats.dtype, probs.dtype)

    # Dtype-aware sublane padding of the class dim, folded into the TINY coarse probs
    # before the upsample (no extra HBM pass over the upsampled map).
    sub = {4: 8, 2: 16, 1: 32}.get(jnp.dtype(probs.dtype).itemsize, 8)
    cls_pad = -(-cls // sub) * sub
    if cls_pad > cls:
        probs = jnp.pad(probs, ((0, 0), (0, cls_pad - cls), (0, 0), (0, 0)))

    probs_up = _bilinear_align_corners(probs, h, w)        # (B, CLS_p, H, W), native dtype
    probs_flat = probs_up.reshape(b, cls_pad, n)           # (B, CLS_p, N)
    feats_flat = feats.reshape(b, c, n)                    # (B, C,     N) native layout/dtype

    n_cores = _num_tensorcores()
    c_tile = _choose_c_tile(c, n_cores)
    if tile_target_bytes is None:
        tile_target_bytes = _default_tile_target_bytes()
    tn, ragged = _choose_n_tile(n, c_tile, cls_pad,
                                feats_flat.dtype.itemsize, probs_flat.dtype.itemsize,
                                tile_target_bytes)

    ocr = _spatial_gather_pallas(probs_flat, feats_flat, c_tile, tn, ragged,
                                 feats_buffers)            # (B, CLS_p, C) f32
    ocr = ocr[:, :cls, :]
    # .permute(0, 2, 1).unsqueeze(3)  ->  (B, C, CLS, 1)
    return ocr.transpose(0, 2, 1)[..., None].astype(out_dtype)


# ----------------------------------------------------------------------------
# Pure-JAX reference for verification
# ----------------------------------------------------------------------------
def _reference(feats, probs):
    b, c, h, w = feats.shape
    p = _bilinear_align_corners(probs, h, w)
    cls = p.shape[1]
    p = p.reshape(b, cls, h * w).astype(jnp.float32)
    f = feats.reshape(b, c, h * w).transpose(0, 2, 1).astype(jnp.float32)
    p = jax.nn.softmax(p, axis=2)
    out = jnp.matmul(p, f)                                 # (B, CLS, C)
    return out.transpose(0, 2, 1)[..., None]               # (B, C, CLS, 1)


if __name__ == "__main__":
    key = jax.random.PRNGKey(0)

    # ---- check 1: small shapes implied by the module -----------------------------
    k1, k2 = jax.random.split(key)
    B, C, H, W = 2, 4, 16, 16         # feature map
    CLS, HP, WP = 8, 8, 8             # coarse class-probability map
    feats = jax.random.normal(k1, (B, C, H, W), dtype=jnp.float32)
    probs = jax.random.normal(k2, (B, CLS, HP, WP), dtype=jnp.float32)
    out = jax.block_until_ready(spatial_gather(feats, probs))
    ref = _reference(feats, probs)
    assert out.shape == (B, C, CLS, 1), out.shape
    assert jnp.allclose(out, ref, atol=2e-4, rtol=2e-4), "mismatch vs reference (main)"

    # ---- check 2: CLS padding + N tiling + ragged (masked) last N tile -----------
    k3, k4 = jax.random.split(k1)
    feats2 = jax.random.normal(k3, (1, 32, 12, 12), dtype=jnp.float32)
    probs2 = jax.random.normal(k4, (1, 21, 6, 6), dtype=jnp.float32)
    out2 = jax.block_until_ready(
        spatial_gather(feats2, probs2, tile_target_bytes=128 * 32 * 4))
    ref2 = _reference(feats2, probs2)
    assert out2.shape == (1, 32, 21, 1), out2.shape
    assert jnp.allclose(out2, ref2, atol=2e-4, rtol=2e-4), "mismatch vs reference (ragged)"

    # ---- check 3: large C (v7x dual-TC split path when applicable) ---------------
    k5, k6 = jax.random.split(k2)
    feats3 = jax.random.normal(k5, (1, 512, 8, 8), dtype=jnp.float32)
    probs3 = jax.random.normal(k6, (1, 21, 8, 8), dtype=jnp.float32)
    out3 = jax.block_until_ready(spatial_gather(feats3, probs3))
    ref3 = _reference(feats3, probs3)
    assert out3.shape == (1, 512, 21, 1), out3.shape
    assert jnp.allclose(out3, ref3, atol=2e-4, rtol=2e-4), "mismatch vs reference (c-split)"

    # ---- check 4: bf16 feats (softmax tile cast DOWN, no f32 widening of feats) --
    k7, k8 = jax.random.split(k3)
    feats4 = jax.random.normal(k7, (1, 64, 16, 16), dtype=jnp.bfloat16)
    probs4 = jax.random.normal(k8, (1, 21, 8, 8), dtype=jnp.float32)
    out4 = jax.block_until_ready(spatial_gather(feats4, probs4))
    ref4 = _reference(feats4, probs4)
    assert out4.shape == (1, 64, 21, 1), out4.shape
    assert jnp.allclose(out4.astype(jnp.float32), ref4, atol=2e-2, rtol=2e-2), \
        "mismatch vs reference (bf16)"

    print("KERNEL_OK")
</pallas_src>

<mosaic_0001>
module attributes {stable_mosaic.version = 11 : i64} {
  func.func @kernel(%arg0: i32, %arg1: i32, %arg2: i32, %arg3: memref<1x8x256xf32, #tpu.memory_space<vmem>>, %arg4: memref<1x4x256xf32, #tpu.memory_space<vmem>>, %arg5: memref<1x8x4xf32, #tpu.memory_space<vmem>>, %arg6: memref<8x1xf32, #tpu.memory_space<vmem>>, %arg7: memref<8x1xf32, #tpu.memory_space<vmem>>, %arg8: memref<8x4xf32, #tpu.memory_space<vmem>>) attributes {dimension_semantics = [#tpu.dimension_semantics<parallel>, #tpu.dimension_semantics<parallel>, #tpu.dimension_semantics<arbitrary>], iteration_bounds = array<i64: 2, 1, 1>, scalar_prefetch = 0 : i64, scratch_operands = 3 : i64, tpu.core_type = #tpu.core_type<tc>, window_params = [{transform_indices = @transform_0, window_bounds = array<i64: 1, 8, 256>}, {transform_indices = @transform_1, window_bounds = array<i64: 1, 4, 256>}, {transform_indices = @transform_2, window_bounds = array<i64: 1, 8, 4>}]} {
    %c0_i32 = arith.constant 0 : i32
    %0 = arith.cmpi eq, %arg2, %c0_i32 : i32
    %1 = arith.extui %0 : i1 to i32
    %c0_i32_0 = arith.constant 0 : i32
    %2 = arith.cmpi ne, %1, %c0_i32_0 : i32
    scf.if %2 {
      %cst_22 = arith.constant -1.000000e+30 : f32
      %32 = vector.broadcast %cst_22 : f32 to vector<8x1xf32>
      %c0_23 = arith.constant 0 : index
      %c0_24 = arith.constant 0 : index
      %33 = vector.load %arg6[%c0_23, %c0_24] : memref<8x1xf32, #tpu.memory_space<vmem>>, vector<8x1xf32>
      tpu.vector_store %arg6[%c0_23, %c0_24], %32 {strides = array<i32>} : memref<8x1xf32, #tpu.memory_space<vmem>>, vector<8x1xf32>,
      %cst_25 = arith.constant 0.000000e+00 : f32
      %34 = vector.broadcast %cst_25 : f32 to vector<8x1xf32>
      %c0_26 = arith.constant 0 : index
      %c0_27 = arith.constant 0 : index
      %35 = vector.load %arg7[%c0_26, %c0_27] : memref<8x1xf32, #tpu.memory_space<vmem>>, vector<8x1xf32>
      tpu.vector_store %arg7[%c0_26, %c0_27], %34 {strides = array<i32>} : memref<8x1xf32, #tpu.memory_space<vmem>>, vector<8x1xf32>,
      %cst_28 = arith.constant 0.000000e+00 : f32
      %36 = vector.broadcast %cst_28 : f32 to vector<8x4xf32>
      %c0_29 = arith.constant 0 : index
      %c0_30 = arith.constant 0 : index
      %37 = vector.load %arg8[%c0_29, %c0_30] : memref<8x4xf32, #tpu.memory_space<vmem>>, vector<8x4xf32>
      tpu.vector_store %arg8[%c0_29, %c0_30], %36 {strides = array<i32>} : memref<8x4xf32, #tpu.memory_space<vmem>>, vector<8x4xf32>,
    } else {
    }
    %c0 = arith.constant 0 : index
    %c0_1 = arith.constant 0 : index
    %c0_2 = arith.constant 0 : index
    %3 = vector.load %arg3[%c0, %c0_1, %c0_2] : memref<1x8x256xf32, #tpu.memory_space<vmem>>, vector<1x8x256xf32>
    %4 = vector.shape_cast %3 : vector<1x8x256xf32> to vector<8x256xf32>
    %c0_3 = arith.constant 0 : index
    %c0_4 = arith.constant 0 : index
    %c0_5 = arith.constant 0 : index
    %5 = vector.load %arg4[%c0_3, %c0_4, %c0_5] : memref<1x4x256xf32, #tpu.memory_space<vmem>>, vector<1x4x256xf32>
    %6 = vector.shape_cast %5 : vector<1x4x256xf32> to vector<4x256xf32>
    %c0_6 = arith.constant 0 : index
    %c0_7 = arith.constant 0 : index
    %7 = vector.load %arg6[%c0_6, %c0_7] : memref<8x1xf32, #tpu.memory_space<vmem>>, vector<8x1xf32>
    %cst = arith.constant dense<0xFF800000> : vector<8xf32>
    %8 = vector.multi_reduction <maximumf>, %4, %cst [1] : vector<8x256xf32> to vector<8xf32>
    %9 = vector.shape_cast %8 : vector<8xf32> to vector<8x1xf32>
    %10 = arith.maximumf %7, %9 : vector<8x1xf32>
    %11 = arith.subf %7, %10 : vector<8x1xf32>
    %12 = math.exp %11 : vector<8x1xf32>
    %13 = vector.broadcast %10 : vector<8x1xf32> to vector<8x256xf32>
    %14 = arith.subf %4, %13 : vector<8x256xf32>
    %15 = math.exp %14 : vector<8x256xf32>
    %c0_8 = arith.constant 0 : index
    %c0_9 = arith.constant 0 : index
    %16 = vector.load %arg7[%c0_8, %c0_9] : memref<8x1xf32, #tpu.memory_space<vmem>>, vector<8x1xf32>
    %17 = arith.mulf %12, %16 : vector<8x1xf32>
    %cst_10 = arith.constant dense<0.000000e+00> : vector<8xf32>
    %18 = vector.multi_reduction <add>, %15, %cst_10 [1] : vector<8x256xf32> to vector<8xf32>
    %19 = vector.shape_cast %18 : vector<8xf32> to vector<8x1xf32>
    %20 = arith.addf %17, %19 : vector<8x1xf32>
    %c0_11 = arith.constant 0 : index
    %c0_12 = arith.constant 0 : index
    %21 = vector.load %arg7[%c0_11, %c0_12] : memref<8x1xf32, #tpu.memory_space<vmem>>, vector<8x1xf32>
    tpu.vector_store %arg7[%c0_11, %c0_12], %20 {strides = array<i32>} : memref<8x1xf32, #tpu.memory_space<vmem>>, vector<8x1xf32>,
    %c0_13 = arith.constant 0 : index
    %c0_14 = arith.constant 0 : index
    %22 = vector.load %arg6[%c0_13, %c0_14] : memref<8x1xf32, #tpu.memory_space<vmem>>, vector<8x1xf32>
    tpu.vector_store %arg6[%c0_13, %c0_14], %10 {strides = array<i32>} : memref<8x1xf32, #tpu.memory_space<vmem>>, vector<8x1xf32>,
    %c0_15 = arith.constant 0 : index
    %c0_16 = arith.constant 0 : index
    %23 = vector.load %arg8[%c0_15, %c0_16] : memref<8x4xf32, #tpu.memory_space<vmem>>, vector<8x4xf32>
    %24 = vector.broadcast %12 : vector<8x1xf32> to vector<8x4xf32>
    %25 = arith.mulf %24, %23 : vector<8x4xf32>
    %cst_17 = arith.constant dense<0.000000e+00> : vector<8x4xf32>
    %26 = tpu.matmul %15, %6, %cst_17 {dimension_numbers = #tpu.dot_dimension_numbers<[1], [1], [0], [0], [0, 0, 1, 0], [], []>} : vector<8x256xf32>, vector<4x256xf32>, vector<8x4xf32> -> vector<8x4xf32>
    %27 = arith.addf %25, %26 : vector<8x4xf32>
    %c0_18 = arith.constant 0 : index
    %c0_19 = arith.constant 0 : index
    %28 = vector.load %arg8[%c0_18, %c0_19] : memref<8x4xf32, #tpu.memory_space<vmem>>, vector<8x4xf32>
    tpu.vector_store %arg8[%c0_18, %c0_19], %27 {strides = array<i32>} : memref<8x4xf32, #tpu.memory_space<vmem>>, vector<8x4xf32>,
    %c0_i32_20 = arith.constant 0 : i32
    %29 = arith.cmpi eq, %arg2, %c0_i32_20 : i32
    %30 = arith.extui %29 : i1 to i32
    %c0_i32_21 = arith.constant 0 : i32
    %31 = arith.cmpi ne, %30, %c0_i32_21 : i32
    scf.if %31 {
      %c0_22 = arith.constant 0 : index
      %c0_23 = arith.constant 0 : index
      %32 = vector.load %arg7[%c0_22, %c0_23] : memref<8x1xf32, #tpu.memory_space<vmem>>, vector<8x1xf32>
      %33 = tpu.reciprocal %32 {approx = true} : vector<8x1xf32> -> vector<8x1xf32>
      %34 = arith.mulf %32, %33 : vector<8x1xf32>
      %cst_24 = arith.constant 2.000000e+00 : f32
      %35 = vector.broadcast %cst_24 : f32 to vector<8x1xf32>
      %36 = arith.subf %35, %34 : vector<8x1xf32>
      %37 = arith.mulf %33, %36 : vector<8x1xf32>
      %c0_25 = arith.constant 0 : index
      %c0_26 = arith.constant 0 : index
      %38 = vector.load %arg8[%c0_25, %c0_26] : memref<8x4xf32, #tpu.memory_space<vmem>>, vector<8x4xf32>
      %39 = vector.broadcast %37 : vector<8x1xf32> to vector<8x4xf32>
      %40 = arith.mulf %38, %39 : vector<8x4xf32>
      %c0_27 = arith.constant 0 : index
      %c0_28 = arith.constant 0 : index
      %c0_29 = arith.constant 0 : index
      %41 = vector.load %arg5[%c0_27, %c0_28, %c0_29] : memref<1x8x4xf32, #tpu.memory_space<vmem>>, vector<1x8x4xf32>
      %42 = vector.shape_cast %41 : vector<1x8x4xf32> to vector<8x4xf32>
      %43 = vector.shape_cast %40 : vector<8x4xf32> to vector<1x8x4xf32>
      tpu.vector_store %arg5[%c0_27, %c0_28, %c0_29], %43 {strides = array<i32>} : memref<1x8x4xf32, #tpu.memory_space<vmem>>, vector<1x8x4xf32>,
    } else {
    }
    return
  }
  func.func @transform_0(%arg0: i32, %arg1: i32, %arg2: i32) -> (i32, i32, i32) {
    %c0_i32 = arith.constant 0 : i32
    %c0_i32_0 = arith.constant 0 : i32
    return %arg0, %c0_i32, %arg2 : i32, i32, i32
  }
  func.func @transform_1(%arg0: i32, %arg1: i32, %arg2: i32) -> (i32, i32, i32) {
    %c0_i32 = arith.constant 0 : i32
    return %arg0, %arg1, %arg2 : i32, i32, i32
  }
  func.func @transform_2(%arg0: i32, %arg1: i32, %arg2: i32) -> (i32, i32, i32) {
    %c0_i32 = arith.constant 0 : i32
    %c0_i32_0 = arith.constant 0 : i32
    return %arg0, %c0_i32, %arg1 : i32, i32, i32
  }
}

</mosaic_0001>

<bundles_post_ra>
// kernel: tpu_custom_call.1
= control target key start
LH: loop header
LB: loop body
LE: loop exit
PB: predicated region body
PF: predicated region fallthrough
CT: control target
= control target key end

     0   :  { %7 = vsyncpa [#allocation6], 0  ;;  %s809_s0 = inlined_call_operand.hbm [shape: f32[2,8,256], index: 0, kind: input, shape index: {}]   ;;  %s810_s1 = inlined_call_operand.hbm [shape: f32[2,4,256], index: 1, kind: input, shape index: {}]   ;;  %s811_s2 = inlined_call_operand.vmem [shape: f32[2,8,4], index: 2, kind: output, shape index: {}]  }
   0x1   :  { %9 = vsyncpa [#allocation6 + $0x1], 0 }
   0x2   :  { %10 = vsyncpa [#allocation8], 0 }
   0x3   :  { %12 = vsyncpa [#allocation8 + $0x1], 0  ;;  %s698_s9 = smov 0   ;;  %s700_s10 = smov 0  }
   0x4   :  { %s702_s11 = smov 0   ;;  %s704_s12 = smov 0  }
   0x5   :  { %s706_s13 = smov 0   ;;  %s708_s14 = smov 0  }
   0x6 LB: > { %s472_s15 = sadd.s32 4294967295, %s678_s14   ;;  %s37_s16 = sadd.s32 1, %s674_s13  ;;  %s678_s14 = sphi %s708_s14, %s18_s14   ;;  %s674_s13 = sphi %s706_s13, %s819_s13   ;;  %s670_s12 = sphi %s704_s12, %s818_s12   ;;  %s666_s11 = sphi %s702_s11, %s817_s11   ;;  %s662_s10 = sphi %s700_s10, %s816_s10   ;;  %s658_s9 = sphi %s698_s9, %s815_s9  }
   0x7   : > { %p39_p0 = scmp.ge.s32.totalorder %s37_s16, 2  ;;  %s46_s17 = sadd.s32 1, %s666_s11 }
   0x8   : > { %p53_p1 = scmp.ne.s32.totalorder %s666_s11, %s662_s10  ;;  %p54_p2 = scmp.eq.s32.totalorder %s678_s14, 0 }
   0x9   : > { %s821_s16 = smov (%p39_p0, %s37_s16), 0  ;;  %p59_p4 = scmp.ne.s32.totalorder %s662_s10, %s658_s9 }
   0xa   : > { %p734_p3 = por %p54_p2, %p53_p1  ;;  %s41_s19 = ssub.s32 %s674_s13, %s821_s16 }
   0xb   : > { %p60_p5 = scmp.eq.s32.totalorder %s472_s15, 0  ;;  %p44_p6 = scmp.eq.s32.totalorder %s41_s19, 0 }
   0xc   : > { %p501_p8 = scmp.lt.s32.totalorder %s678_s14, 2  ;;  %s141_s22 = sand.u32 1, %s666_s11  }
   0xd   : > { %p741_p7 = por %p60_p5, %p59_p4  ;;  %s488_s23 = sshll.u32 %s674_s13, 4 }
   0xe   : > { %s747_s21 = scalar_select %p44_p6, %s666_s11, %s46_s17  }
   0xf   : > { %s476_s24 = sshll.u32 %s141_s22, 4  ;;  %s152_s27 = scalar_lea.hbm %s809_s0, %s488_s23 }
  0x10   : > { %s154_s28 = sshll.u32 %s152_s27, 4  ;;  %s145_s29 = scalar_lea.vmem [#allocation5], %s476_s24  ;;  %s155_s28 = int_to_ptr.hbm [resolvable:$true] %s154_s28 }
  0x11   : > { %s156_s30 = sshll.u32 %s145_s29, 4  ;;  %p756_p9 = pnand %p501_p8, %p734_p3  ;;  %s157_s30 = int_to_ptr.vmem [resolvable:$true] %s156_s30 }
  0x12   : > { %p482_p10 = scmp.ge.s32.totalorder %s678_s14, 1  ;;  %p185_p11 = scmp.lt.s32.totalorder %s678_s14, 3 }
  0x13   : > { %s479_s4 = sshll.u32 %s141_s22, 3  ;;  %s142_s5 = scalar_lea.sflag [#allocation6], %s141_s22 }
  0x14   : > { %497 = dma.hbm_to_vmem [thread:$0]  (!%p756_p9), %s155_s28, 256, %s157_s30, %s142_s5  }
  0x15   : > { %p186_p12 = pnand %p482_p10, %p185_p11  ;;  %s489_s6 = sshll.u32 %s674_s13, 3 }
  0x16   : > { %s167_s7 = scalar_lea.vmem [#allocation7], %s479_s4  ;;  %s176_s17 = scalar_lea.hbm %s810_s1, %s489_s6 }
  0x17   : > { %s180_s8 = sshll.u32 %s167_s7, 4  ;;  %s178_s18 = sshll.u32 %s176_s17, 4  ;;  %s181_s8 = int_to_ptr.vmem [resolvable:$true] %s180_s8  ;;  %s179_s18 = int_to_ptr.hbm [resolvable:$true] %s178_s18 }
  0x18   : > { %s164_s19 = scalar_lea.sflag [#allocation8], %s141_s22  ;;  %189 = sbr.rel (%p186_p12) target bundleno = 516 (0x204), region = 28 }
  0x19   : > { %500 = dma.hbm_to_vmem [thread:$0]  (!%p756_p9), %s179_s18, 128, %s181_s8, %s164_s19  }
  0x1a   : > { %s191_s23 = sand.u32 (!%p186_p12), 1, %s662_s10  }
  0x1b   : > { %s483_s24 = sshll.u32 (!%p186_p12), %s191_s23, 4  ;;  %s192_s25 = scalar_lea.sflag (!%p186_p12), [#allocation6], %s191_s23 }
  0x1c   : > { %s195_s26 = scalar_lea.vmem (!%p186_p12), [#allocation5], %s483_s24 }
  0x1d   : > { %649 = dma.done.wait (%p741_p7), %s192_s25, 256  }
  0x1e   : > { %651 = vsyncadd (%p741_p7), %s192_s25, 4294967040  ;;  %s484_s27 = sshll.u32 %s191_s23, 3  ;;  %s202_s28 = scalar_lea.sflag [#allocation8], %s191_s23 }
  0x1f   : > { %s205_s29 = scalar_lea.vmem [#allocation7], %s484_s27 }
  0x20   : > { %653 = dma.done.wait (%p741_p7), %s202_s28, 128  }
  0x21   : > { %655 = vsyncadd (%p741_p7), %s202_s28, 4294967168  ;;  %vm247_vm0 = vcmask 7168   ;;  %v680_v0 = vmov -1e+30   ;;  %v252_v1 = vld [vmem:[%s195_s26] sm:$0xff]  ;;  %v253_v2 = vld [vmem:[%s195_s26 + $0x8] sm:$0xff] }
  0x22   : > { %248 = vst.msk [vmem:[#allocation2] sm:$0xff] %vm247_vm0, %v680_v0  ;;  %v256_v3 = vmax.f32 %v252_v1, %v253_v2  ;;  %v681_v4 = vmov 0   ;;  %v682_v5 = vmov 0.0   ;;  %v254_v10 = vld [vmem:[%s205_s29] sm:$0xff]  ;;  %vm250_vm1 = vcmask 31744   ;;  %p236_p13 = scmp.lt.s32.totalorder %s670_s12, 1 }
  0x23   : > { %553 = vset.pattern.permute.xlu0 %v681_v4  ;;  %554 = vset.pattern.permute.xlu1 %v681_v4  ;;  %249 = vst.msk [vmem:[#allocation3] sm:$0xff] %vm247_vm0, %v682_v5 }
  0x24   : > { %257 = vmax.xlane.f32.xlu0 %v256_v3  ;;  %555 = vset.pattern.permute.xlu2 %v681_v4  ;;  %291 = vst [vmem:[#allocation1] ss:$2 sm:$0xff] %v254_v10  ;;  %s823_s12 = smov (!%p236_p13, %s670_s12), 1 }
  0x25   : > { %251 = vst.msk [vmem:[#allocation4] sm:$0xff] %vm250_vm1, %v682_v5  ;;  %s485_s20 = sshll.u32 %s823_s12, 3 }
  0x26   : > { %s242_s3 = scalar_lea.vmem %s811_s2, %s485_s20 }
  0x29   : > { %v255_v6 = vld [vmem:[#allocation2] sm:$0xff] }
  0x2a   : > { %v274_v23 = vld [vmem:[#allocation3] sm:$0xff] }
  0x2b   : > { %v292_v11 = vld.sshfl [vmem:[#allocation1] sm:$0xff pattern:$0x75316420]  ;;  %v293_v12 = vld.sshfl [vmem:[#allocation1 + $0x8] sm:$0xff pattern:$0x75316420] }
  0x2c   : > { %311 = vmatpush.xpose.msra.mxu0 %v292_v11  ;;  %331 = vmatpush.xpose.msra.mxu1 %v293_v12  ;;  %v283_v33 = vld [vmem:[#allocation4] sm:$0xff] }
  0x97   : > { %v258_v7 = vpop.xlane.xlu0 %257 }
  0x98   : > { %v259_v8 = vmax.f32 %v255_v6, %v258_v7 }
  0x9a   : > { %v260_v9 = vsub.f32 %v255_v6, %v259_v8  ;;  %282 = vst.msk [vmem:[#allocation2] sm:$0xff] %vm247_vm0, %v259_v8  ;;  %265 = vperm.xlu0 %553, %v259_v8  }
  0x9c   : > { %v261_v21 = vmul.f32 1.442695, %v260_v9 }
 0x10c   : > { %v266_v13 = vpop.permute.xlu0 %265 }
 0x10d   : > { %v268_v14 = vsub.f32 %v252_v1, %v266_v13  ;;  %v269_v15 = vsub.f32 %v253_v2, %v266_v13 }
 0x10f   : > { %v270_v16 = vmul.f32 1.442695, %v268_v14  ;;  %v272_v17 = vmul.f32 1.442695, %v269_v15 }
 0x111   : > { %556 = vpow2.f32 %v270_v16 }
 0x112   : > { %558 = vpow2.f32 %v272_v17 }
 0x113   : > { %560 = vpow2.f32 %v261_v21 }
 0x117   : > { %v557_v18 = vpop.eup %556 }
 0x118   : > { %v559_v19 = vpop.eup %558  ;;  %312 = vmatmul.f32.vlgmr.msra.gmra.mxu0 %v557_v18 }
 0x119   : > { %332 = vmatmul.f32.vlgmr.msra.gmra.mxu1 %v559_v19  ;;  %v276_v20 = vadd.f32 %v559_v19, %v557_v18  ;;  %v561_v22 = vpop.eup %560 }
 0x11a   : > { %v275_v24 = vmul.f32 %v561_v22, %v274_v23 }
 0x11b   : > { %277 = vadd.xlane.f32.xlu1 %v276_v20 }
 0x134   : > { %286 = vperm.xlu1 %554, %v561_v22  }
 0x18e   : > { %v278_v25 = vpop.xlane.xlu1 %277 }
 0x18f   : > { %v279_v26 = vadd.f32 %v278_v25, %v275_v24 }
 0x191   : > { %281 = vst.msk [vmem:[#allocation3] sm:$0xff] %vm247_vm0, %v279_v26 }
 0x195   : > { %v313_v31 = vpop.f32.mrf.mxu0 }
 0x196   : > { %v333_v32 = vpop.f32.mrf.mxu1 }
 0x197   : > { %v334_v36 = vadd.f32 %v333_v32, %v313_v31 }
 0x198   : > { %v342_v27 = vld [vmem:[#allocation3] sm:$0xff] }
 0x199   : > { %562 = vrcp.f32 %v342_v27 }
 0x19f   : > { %v563_v28 = vpop.eup %562 }
 0x1a0   : > { %v344_v29 = vmul.f32 %v563_v28, %v342_v27 }
 0x1a2   : > { %v345_v30 = vsub.f32 2.0, %v344_v29 }
 0x1a4   : > { %v346_v34 = vmul.f32 %v563_v28, %v345_v30 }
 0x1a6   : > { %v287_v35 = vpop.permute.xlu1 %286  ;;  %350 = vperm.xlu2 %555, %v346_v34  }
 0x1a7   : > { %v289_v37 = vmul.f32 %v287_v35, %v283_v33 }
 0x1a9   : > { %v336_v38 = vadd.f32 %v334_v36, %v289_v37 }
 0x1ab   : > { %338 = vst.msk [vmem:[#allocation4] sm:$0xff] %vm250_vm1, %v336_v38 }
 0x1b2   : > { %v347_v39 = vld [vmem:[#allocation4] sm:$0xff] }
 0x200   : > { %v351_v40 = vpop.permute.xlu2 %350 }
 0x201   : > { %v353_v41 = vmul.f32 %v351_v40, %v347_v39 }
 0x203   : > { %354 = vst.msk [vmem:[%s242_s3] sm:$0xff] %vm250_vm1, %v353_v41 }
 0x204 PF: > { %s18_s14 = sadd.s32 1, %s678_s14   ;;  %s815_s9 = smov %s662_s10 }
 0x205   : > { %p15_p0 = scmp.ge.s32.totalorder %s18_s14, 4   ;;  %s816_s10 = smov %s666_s11 }
 0x206   : > { %s817_s11 = smov %s747_s21  ;;  %s818_s12 = smov %s674_s13 }
 0x207   : > { %s819_s13 = smov %s821_s16  ;;  %17 = sbr.rel (!%p15_p0) target bundleno = 6 (0x6), region = 89 }
 0x20c   :  { %380 = vsyncpa [#allocation6], 1 }
 0x20d   :  { %382 = vsyncpa [#allocation6 + $0x1], 1 }
 0x20e   :  { %383 = vsyncpa [#allocation8], 1 }
 0x20f   :  { %385 = vsyncpa [#allocation8 + $0x1], 1 }

</bundles_post_ra>
